<compile_context>
chip_gen: v5e
topology: v5e:2x2
jax: 0.10.0
libtpu: 0.0.40
codegen_flags: <defaults>
</compile_context>

<pallas_src>
import functools

import jax
import jax.numpy as jnp
from jax.experimental import pallas as pl
from jax.experimental.pallas import tpu as pltpu


def _prompt_kernel(prefix_ref, ctx_ref, suffix_ref, out_ref, *, n_ctx):
    # prefix_ref: (C_BLK, 1, D)       frozen SOS embedding, per class
    # ctx_ref:    (n_ctx, D)          shared learnable context (same block each step)
    # suffix_ref: (C_BLK, S, D)       frozen class-name + EOS embeddings
    # out_ref:    (C_BLK, 1+n_ctx+S, D)
    c_blk, _, d = out_ref.shape
    out_dtype = out_ref.dtype

    # Segment 1: SOS prefix (pass-through copy).
    out_ref[:, 0:1, :] = prefix_ref[...].astype(out_dtype)

    # Segment 2: learnable ctx broadcast across the whole class block in ONE
    # contiguous store (single large vst stream, important on v5e's 1 vst slot).
    ctx_b = jnp.broadcast_to(ctx_ref[...].astype(out_dtype)[None], (c_blk, n_ctx, d))
    out_ref[:, 1:1 + n_ctx, :] = ctx_b

    # Segment 3: class-name + EOS suffix (pass-through copy).
    out_ref[:, 1 + n_ctx:, :] = suffix_ref[...].astype(out_dtype)


def vl_prompt_learner_forward(ctx, token_prefix, token_suffix, *,
                              class_block=None,
                              vmem_block_budget_bytes=16 << 20):
    """Equivalent of VLPromptLearner.forward().

    ctx:          (n_ctx, D)     learnable context vectors
    token_prefix: (n_cls, 1, D)  frozen SOS embedding per class
    token_suffix: (n_cls, S, D)  frozen class-name/EOS embeddings per class
    returns:      (n_cls, 1+n_ctx+S, D)
    """
    n_ctx, d = ctx.shape
    n_cls, one, d2 = token_prefix.shape
    assert one == 1 and d2 == d
    _, s_suffix, d3 = token_suffix.shape
    assert d3 == d
    seq_len = 1 + n_ctx + s_suffix

    out_dtype = ctx.dtype
    itemsize = jnp.dtype(out_dtype).itemsize

    # Auto-size the class block against VMEM: double-buffered prefix + suffix
    # + out blocks must fit inside `vmem_block_budget_bytes` (default 16 MiB,
    # which is safe on every generation incl. v7x's 64 MiB VMEM).
    per_class_bytes = 2 * (1 + s_suffix + seq_len) * d * itemsize
    if class_block is None:
        class_block = max(1, min(n_cls, vmem_block_budget_bytes // per_class_bytes))
    class_block = int(class_block)

    kernel = functools.partial(_prompt_kernel, n_ctx=n_ctx)
    grid = (pl.cdiv(n_cls, class_block),)

    # TODO(synk): the frozen prefix/suffix slabs could bypass VMEM entirely via
    # direct HBM->HBM make_async_copy into the output; kept in the pipelined
    # path here for simplicity since they are already blocked coarsely.
    return pl.pallas_call(
        kernel,
        out_shape=jax.ShapeDtypeStruct((n_cls, seq_len, d), out_dtype),
        grid_spec=pltpu.PrefetchScalarGridSpec(
            num_scalar_prefetch=0,
            grid=grid,
            in_specs=[
                pl.BlockSpec((class_block, 1, d), lambda c: (c, 0, 0)),         # prefix
                pl.BlockSpec((n_ctx, d), lambda c: (0, 0)),                      # ctx (shared)
                pl.BlockSpec((class_block, s_suffix, d), lambda c: (c, 0, 0)),   # suffix
            ],
            out_specs=pl.BlockSpec((class_block, seq_len, d), lambda c: (c, 0, 0)),
        ),
        compiler_params=pltpu.CompilerParams(
            dimension_semantics=("parallel",),      # class axis -> megacore on v7x
            vmem_limit_bytes=32 << 20,              # lift v5e's 16 MiB scoped default
        ),
    )(token_prefix, ctx, token_suffix)


if __name__ == "__main__":
    # Small, module-consistent shapes:
    #   n_cls classnames, n_ctx learnable text context tokens, ctx_dim embedding
    #   width, total tokenized length seq_len (prefix 1 + ctx + suffix).
    n_cls = 10
    n_ctx = 4
    ctx_dim = 128
    seq_len = 16
    s_suffix = seq_len - 1 - n_ctx
    dtype = jnp.float32

    key = jax.random.PRNGKey(0)
    k_ctx, k_pre, k_suf = jax.random.split(key, 3)

    # ctx ~ Normal(0, 0.02) as in nn.init.normal_(ctx_vectors, std=0.02)
    ctx = (0.02 * jax.random.normal(k_ctx, (n_ctx, ctx_dim))).astype(dtype)
    # Frozen token embeddings (synthetic stand-in for clip_model.token_embedding).
    # TODO(synk): real module uses the CLIP tokenizer + token_embedding lookup;
    # here we substitute deterministic random embeddings of the correct shapes.
    token_prefix = jax.random.normal(k_pre, (n_cls, 1, ctx_dim)).astype(dtype)
    token_suffix = jax.random.normal(k_suf, (n_cls, s_suffix, ctx_dim)).astype(dtype)

    # Reference (same semantics as torch.cat along dim=1 after expand).
    ref = jnp.concatenate(
        [token_prefix,
         jnp.broadcast_to(ctx[None], (n_cls, n_ctx, ctx_dim)),
         token_suffix],
        axis=1)

    # 1) Auto class-block (at this demo size the whole problem fits one grid step).
    prompts = vl_prompt_learner_forward(ctx, token_prefix, token_suffix)
    prompts = jax.block_until_ready(prompts)
    assert prompts.shape == (n_cls, seq_len, ctx_dim)
    assert jnp.array_equal(prompts, ref)

    # 2) Forced smaller class block -> multiple grid steps (incl. a partial
    #    trailing block), exercising the blocked path used at real n_cls.
    prompts_blk = vl_prompt_learner_forward(ctx, token_prefix, token_suffix,
                                            class_block=4)
    prompts_blk = jax.block_until_ready(prompts_blk)
    assert jnp.array_equal(prompts_blk, ref)

    print("KERNEL_OK")
</pallas_src>

<mosaic_0001>
module attributes {stable_mosaic.version = 11 : i64} {
  func.func @_prompt_kernel(%arg0: i32, %arg1: memref<10x1x128xf32, #tpu.memory_space<vmem>>, %arg2: memref<4x128xf32, #tpu.memory_space<vmem>>, %arg3: memref<10x11x128xf32, #tpu.memory_space<vmem>>, %arg4: memref<10x16x128xf32, #tpu.memory_space<vmem>>) attributes {dimension_semantics = [#tpu.dimension_semantics<parallel>], iteration_bounds = array<i64: 1>, scalar_prefetch = 0 : i64, scratch_operands = 0 : i64, tpu.core_type = #tpu.core_type<tc>, window_params = [{transform_indices = @transform_0, window_bounds = array<i64: 10, 1, 128>}, {pipeline_mode = #tpu.pipeline_mode<synchronous>, transform_indices = @transform_1, window_bounds = array<i64: 4, 128>}, {transform_indices = @transform_2, window_bounds = array<i64: 10, 11, 128>}, {transform_indices = @transform_3, window_bounds = array<i64: 10, 16, 128>}]} {
    %c0 = arith.constant 0 : index
    %c0_0 = arith.constant 0 : index
    %c0_1 = arith.constant 0 : index
    %0 = vector.load %arg1[%c0, %c0_0, %c0_1] : memref<10x1x128xf32, #tpu.memory_space<vmem>>, vector<10x1x128xf32>
    %c0_2 = arith.constant 0 : index
    %c0_3 = arith.constant 0 : index
    %c0_4 = arith.constant 0 : index
    %1 = vector.load %arg4[%c0_2, %c0_3, %c0_4] : memref<10x16x128xf32, #tpu.memory_space<vmem>>, vector<10x1x128xf32>
    tpu.vector_store %arg4[%c0_2, %c0_3, %c0_4], %0 {strides = array<i32>} : memref<10x16x128xf32, #tpu.memory_space<vmem>>, vector<10x1x128xf32>,
    %c0_5 = arith.constant 0 : index
    %c0_6 = arith.constant 0 : index
    %2 = vector.load %arg2[%c0_5, %c0_6] : memref<4x128xf32, #tpu.memory_space<vmem>>, vector<4x128xf32>
    %3 = vector.shape_cast %2 : vector<4x128xf32> to vector<1x4x128xf32>
    %4 = vector.shape_cast %3 : vector<1x4x128xf32> to vector<1x4x128xf32>
    %5 = vector.broadcast %4 : vector<1x4x128xf32> to vector<10x4x128xf32>
    %c0_7 = arith.constant 0 : index
    %c1 = arith.constant 1 : index
    %c0_8 = arith.constant 0 : index
    %6 = vector.load %arg4[%c0_7, %c1, %c0_8] : memref<10x16x128xf32, #tpu.memory_space<vmem>>, vector<10x4x128xf32>
    tpu.vector_store %arg4[%c0_7, %c1, %c0_8], %5 {strides = array<i32>} : memref<10x16x128xf32, #tpu.memory_space<vmem>>, vector<10x4x128xf32>,
    %c0_9 = arith.constant 0 : index
    %c0_10 = arith.constant 0 : index
    %c0_11 = arith.constant 0 : index
    %7 = vector.load %arg3[%c0_9, %c0_10, %c0_11] : memref<10x11x128xf32, #tpu.memory_space<vmem>>, vector<10x11x128xf32>
    %c0_12 = arith.constant 0 : index
    %c5 = arith.constant 5 : index
    %c0_13 = arith.constant 0 : index
    %8 = vector.load %arg4[%c0_12, %c5, %c0_13] : memref<10x16x128xf32, #tpu.memory_space<vmem>>, vector<10x11x128xf32>
    tpu.vector_store %arg4[%c0_12, %c5, %c0_13], %7 {strides = array<i32>} : memref<10x16x128xf32, #tpu.memory_space<vmem>>, vector<10x11x128xf32>,
    return
  }
  func.func @transform_0(%arg0: i32) -> (i32, i32, i32) {
    %c0_i32 = arith.constant 0 : i32
    %c0_i32_0 = arith.constant 0 : i32
    %c0_i32_1 = arith.constant 0 : i32
    return %arg0, %c0_i32, %c0_i32_0 : i32, i32, i32
  }
  func.func @transform_1(%arg0: i32) -> (i32, i32) {
    %c0_i32 = arith.constant 0 : i32
    %c0_i32_0 = arith.constant 0 : i32
    %c0_i32_1 = arith.constant 0 : i32
    return %c0_i32, %c0_i32_0 : i32, i32
  }
  func.func @transform_2(%arg0: i32) -> (i32, i32, i32) {
    %c0_i32 = arith.constant 0 : i32
    %c0_i32_0 = arith.constant 0 : i32
    %c0_i32_1 = arith.constant 0 : i32
    return %arg0, %c0_i32, %c0_i32_0 : i32, i32, i32
  }
  func.func @transform_3(%arg0: i32) -> (i32, i32, i32) {
    %c0_i32 = arith.constant 0 : i32
    %c0_i32_0 = arith.constant 0 : i32
    %c0_i32_1 = arith.constant 0 : i32
    return %arg0, %c0_i32, %c0_i32_0 : i32, i32, i32
  }
}

</mosaic_0001>

<bundles_post_ra>
// kernel: tpu_custom_call.1
= control target key start
LH: loop header
LB: loop body
LE: loop exit
PB: predicated region body
PF: predicated region fallthrough
CT: control target
= control target key end

     0   :  { %8 = vsyncpa [#allocation3], 0  ;;  %s307_s0 = inlined_call_operand.hbm [shape: f32[10,1,128], index: 0, kind: input, shape index: {}]   ;;  %s308_s1 = inlined_call_operand.hbm [shape: f32[4,128], index: 1, kind: input, shape index: {}]   ;;  %s309_s2 = inlined_call_operand.hbm [shape: f32[10,11,128], index: 2, kind: input, shape index: {}]   ;;  %s310_s3 = inlined_call_operand.hbm [shape: f32[10,16,128], index: 3, kind: output, shape index: {}]  }
   0x1   :  { %9 = vsyncpa [#allocation6], 0  ;;  %s29_s14 = sshll.u32 %s308_s1, 4  ;;  %s30_s14 = int_to_ptr.hbm [resolvable:$true] %s29_s14 }
   0x2   :  { %10 = vsyncpa [#allocation4], 0  ;;  %s261_s15 = smov [#allocation5]   ;;  %s15_s19 = sshll.u32 %s307_s0, 4  ;;  %s16_s19 = int_to_ptr.hbm [resolvable:$true] %s15_s19 }
   0x3   :  { %s31_s16 = sshll.u32 %s261_s15, 4  ;;  %s262_s20 = smov [#allocation2]   ;;  %s32_s16 = int_to_ptr.vmem [resolvable:$true] %s31_s16 }
   0x4   :  { %34 = dma.hbm_to_vmem [thread:$0]  %s30_s14, 64, %s32_s16, [#allocation6]  }
   0x5   :  { %s17_s21 = sshll.u32 %s262_s20, 4  ;;  %s263_s22 = smov 16   ;;  %s18_s21 = int_to_ptr.vmem [resolvable:$true] %s17_s21 }
   0x6   :  { %s264_s23 = smov 1   ;;  %s39_s1 = sshll.u32 %s309_s2, 4  ;;  %s40_s1 = int_to_ptr.hbm [resolvable:$true] %s39_s1 }
   0x7   :  { %23 = dma.hbm_to_vmem [thread:$0]  %s16_s19, 160, %s18_s21, [#allocation3], %s263_s22, %s263_s22, %s264_s23  }
   0x8   :  { %s265_s26 = smov [#allocation7]   ;;  %s266_s28 = smov 128  }
   0x9   :  { %s41_s27 = sshll.u32 %s265_s26, 4  ;;  %s267_s29 = smov 8   ;;  %s42_s27 = int_to_ptr.vmem [resolvable:$true] %s41_s27 }
   0xa   :  { %47 = dma.hbm_to_vmem [thread:$0]  %s40_s1, 2560, %s42_s27, [#allocation6], %s266_s28, %s266_s28, %s267_s29  }
   0xb   :  { %255 = dma.done.wait [#allocation3], 160  }
   0xc   :  { %256 = vsyncadd [#allocation3], 4294967136 }
   0xd   :  { %257 = dma.done.wait [#allocation6], 2624  }
   0xe   :  { %258 = vsyncadd [#allocation6], 4294964672  ;;  %v60_v0 = vld [vmem:[#allocation2] sm:$0x1]  ;;  %v61_v1 = vld [vmem:[#allocation2 + $0x1] sm:$0x1] }
   0xf   :  { %v62_v2 = vld [vmem:[#allocation2 + $0x2] sm:$0x1]  ;;  %70 = vst [vmem:[#allocation8] sm:$0x1] %v60_v0  ;;  %v63_v3 = vld [vmem:[#allocation2 + $0x3] sm:$0x1] }
  0x10   :  { %71 = vst [vmem:[#allocation8 + $0x10] sm:$0x1] %v61_v1  ;;  %v64_v4 = vld [vmem:[#allocation2 + $0x4] sm:$0x1]  ;;  %v65_v5 = vld [vmem:[#allocation2 + $0x5] sm:$0x1] }
  0x11   :  { %72 = vst [vmem:[#allocation8 + $0x20] sm:$0x1] %v62_v2  ;;  %v66_v6 = vld [vmem:[#allocation2 + $0x6] sm:$0x1]  ;;  %v67_v7 = vld [vmem:[#allocation2 + $0x7] sm:$0x1] }
  0x12   :  { %73 = vst [vmem:[#allocation8 + $0x30] sm:$0x1] %v63_v3  ;;  %v68_v8 = vld [vmem:[#allocation2 + $0x8] sm:$0x1]  ;;  %v69_v9 = vld [vmem:[#allocation2 + $0x9] sm:$0x1] }
  0x13   :  { %74 = vst [vmem:[#allocation8 + $0x40] sm:$0x1] %v64_v4  ;;  %v80_v10 = vld [vmem:[#allocation5] sm:$0xf]  ;;  %v91_v11 = vld [vmem:[#allocation7] sm:$0xff]  ;;  %v93_v13 = vld [vmem:[#allocation7 + $0x10] sm:$0xff] }
  0x14   :  { %75 = vst [vmem:[#allocation8 + $0x50] sm:$0x1] %v65_v5  ;;  %v92_v12 = vld [vmem:[#allocation7 + $0x8] sm:$0x7]  ;;  %v94_v14 = vld [vmem:[#allocation7 + $0x18] sm:$0x7] }
  0x15   :  { %76 = vst [vmem:[#allocation8 + $0x60] sm:$0x1] %v66_v6  ;;  %v95_v15 = vld [vmem:[#allocation7 + $0x20] sm:$0xff]  ;;  %v96_v16 = vld [vmem:[#allocation7 + $0x28] sm:$0x7]  ;;  %v97_v17 = vld [vmem:[#allocation7 + $0x30] sm:$0xff] }
  0x16   :  { %77 = vst [vmem:[#allocation8 + $0x70] sm:$0x1] %v67_v7  ;;  %v98_v18 = vld [vmem:[#allocation7 + $0x38] sm:$0x7]  ;;  %v99_v19 = vld [vmem:[#allocation7 + $0x40] sm:$0xff]  ;;  %v101_v21 = vld [vmem:[#allocation7 + $0x50] sm:$0xff] }
  0x17   :  { %78 = vst [vmem:[#allocation8 + $0x80] sm:$0x1] %v68_v8  ;;  %v100_v20 = vld [vmem:[#allocation7 + $0x48] sm:$0x7]  ;;  %v102_v22 = vld [vmem:[#allocation7 + $0x58] sm:$0x7] }
  0x18   :  { %79 = vst [vmem:[#allocation8 + $0x90] sm:$0x1] %v69_v9  ;;  %v103_v23 = vld [vmem:[#allocation7 + $0x60] sm:$0xff]  ;;  %v104_v24 = vld [vmem:[#allocation7 + $0x68] sm:$0x7]  ;;  %v105_v25 = vld [vmem:[#allocation7 + $0x70] sm:$0xff] }
  0x19   :  { %81 = vst [vmem:[#allocation8 + $0x1] sm:$0xf] %v80_v10  ;;  %v106_v26 = vld [vmem:[#allocation7 + $0x78] sm:$0x7]  ;;  %v107_v27 = vld [vmem:[#allocation7 + $0x80] sm:$0xff]  ;;  %s268_s0 = smov [#allocation8]  }
  0x1a   :  { %82 = vst [vmem:[#allocation8 + $0x11] sm:$0xf] %v80_v10  ;;  %v108_v28 = vld [vmem:[#allocation7 + $0x88] sm:$0x7]  ;;  %s135_s2 = sshll.u32 %s268_s0, 4  ;;  %s137_s5 = sshll.u32 %s310_s3, 4  ;;  %s136_s2 = int_to_ptr.vmem [resolvable:$true] %s135_s2  ;;  %s138_s5 = int_to_ptr.hbm [resolvable:$true] %s137_s5 }
  0x1b   :  { %83 = vst [vmem:[#allocation8 + $0x21] sm:$0xf] %v80_v10  ;;  %v109_v29 = vld [vmem:[#allocation7 + $0x90] sm:$0xff]  ;;  %v110_v30 = vld [vmem:[#allocation7 + $0x98] sm:$0x7] }
  0x1c   :  { %84 = vst [vmem:[#allocation8 + $0x31] sm:$0xf] %v80_v10 }
  0x1d   :  { %85 = vst [vmem:[#allocation8 + $0x41] sm:$0xf] %v80_v10 }
  0x1e   :  { %86 = vst [vmem:[#allocation8 + $0x51] sm:$0xf] %v80_v10 }
  0x1f   :  { %87 = vst [vmem:[#allocation8 + $0x61] sm:$0xf] %v80_v10 }
  0x20   :  { %88 = vst [vmem:[#allocation8 + $0x71] sm:$0xf] %v80_v10 }
  0x21   :  { %89 = vst [vmem:[#allocation8 + $0x81] sm:$0xf] %v80_v10 }
  0x22   :  { %90 = vst [vmem:[#allocation8 + $0x91] sm:$0xf] %v80_v10 }
  0x23   :  { %111 = vst [vmem:[#allocation8 + $0x5] sm:$0xff] %v91_v11 }
  0x24   :  { %112 = vst [vmem:[#allocation8 + $0xd] sm:$0x7] %v92_v12 }
  0x25   :  { %113 = vst [vmem:[#allocation8 + $0x15] sm:$0xff] %v93_v13 }
  0x26   :  { %114 = vst [vmem:[#allocation8 + $0x1d] sm:$0x7] %v94_v14 }
  0x27   :  { %115 = vst [vmem:[#allocation8 + $0x25] sm:$0xff] %v95_v15 }
  0x28   :  { %116 = vst [vmem:[#allocation8 + $0x2d] sm:$0x7] %v96_v16 }
  0x29   :  { %117 = vst [vmem:[#allocation8 + $0x35] sm:$0xff] %v97_v17 }
  0x2a   :  { %118 = vst [vmem:[#allocation8 + $0x3d] sm:$0x7] %v98_v18 }
  0x2b   :  { %119 = vst [vmem:[#allocation8 + $0x45] sm:$0xff] %v99_v19 }
  0x2c   :  { %120 = vst [vmem:[#allocation8 + $0x4d] sm:$0x7] %v100_v20 }
  0x2d   :  { %121 = vst [vmem:[#allocation8 + $0x55] sm:$0xff] %v101_v21 }
  0x2e   :  { %122 = vst [vmem:[#allocation8 + $0x5d] sm:$0x7] %v102_v22 }
  0x2f   :  { %123 = vst [vmem:[#allocation8 + $0x65] sm:$0xff] %v103_v23 }
  0x30   :  { %124 = vst [vmem:[#allocation8 + $0x6d] sm:$0x7] %v104_v24 }
  0x31   :  { %125 = vst [vmem:[#allocation8 + $0x75] sm:$0xff] %v105_v25 }
  0x32   :  { %126 = vst [vmem:[#allocation8 + $0x7d] sm:$0x7] %v106_v26 }
  0x33   :  { %127 = vst [vmem:[#allocation8 + $0x85] sm:$0xff] %v107_v27 }
  0x34   :  { %128 = vst [vmem:[#allocation8 + $0x8d] sm:$0x7] %v108_v28 }
  0x35   :  { %129 = vst [vmem:[#allocation8 + $0x95] sm:$0xff] %v109_v29 }
  0x36   :  { %130 = vst [vmem:[#allocation8 + $0x9d] sm:$0x7] %v110_v30 }
  0x37   :  { %143 = dma.vmem_to_hbm [thread:$0]  %s136_s2, 2560, %s138_s5, [#allocation4], %s266_s28, %s266_s28, %s267_s29  }
  0x38   :  { %259 = dma.done.wait [#allocation4], 2560  }
  0x39   :  { %260 = vsyncadd [#allocation4], 4294964736 }
  0x3a   :  { %148 = vsyncpa [#allocation3], 1 }
  0x3b   :  { %149 = vsyncpa [#allocation6], 1 }
  0x3c   :  { %150 = vsyncpa [#allocation4], 1 }

</bundles_post_ra>
